<compile_context>
chip_gen: v6e
topology: v6e:2x2x1
jax: 0.10.0
libtpu: 0.0.40
codegen_flags: <defaults>
</compile_context>

<pallas_src>
import jax
import jax.numpy as jnp
from jax.experimental import pallas as pl
from jax.experimental.pallas import tpu as pltpu


class HookBox:
    """Deterministic stand-in for the module's hookbox dependency."""

    def __init__(self, value: float = 0.5):
        self._value = float(value)

    def get(self) -> float:
        return self._value


_PREF_LANE_W = 1024                 # 8 * 128 lanes: lane-dense, unmasked stores
_TILE_BYTES = 4 * 1024 * 1024       # ~4 MiB per input tile (amortizes 0.35 us/step)
_VMEM_LIMIT = 32 * 1024 * 1024      # in+out, double-buffered 4 MiB tiles = 16 MiB


def _side_gate_kernel(gate_ref, x_ref, o_ref):
    # gate_ref: (1,) f32 raw hookbox value in SMEM.
    # Sigmoid computed in-kernel on a (1,1) vector: one EUP exp per grid step,
    # completely hidden under the tile DMA.
    gv = jnp.full((1, 1), gate_ref[0], dtype=jnp.float32)
    sg = 1.0 / (1.0 + jnp.exp(-gv))                 # sigmoid(gate)
    x = x_ref[...].astype(jnp.float32)              # upcast-compute-downcast
    o_ref[...] = (x + sg).astype(o_ref.dtype)


def _run_2d(x2, gate, out_dtype):
    """Run the broadcast-add kernel on a lane-dense (rows, lane_w) slab."""
    rows, lane_w = x2.shape
    itemsize = jnp.dtype(x2.dtype).itemsize
    align = max(8, 32 // itemsize)                  # 8 f32 / 16 bf16 / 32 int8
    budget = (_TILE_BYTES // (lane_w * itemsize)) // align * align
    budget = max(align, budget)
    tile_r = rows if rows <= budget else budget     # full array or aligned tile
    grid = (pl.cdiv(rows, tile_r),)                 # partial last block is masked

    return pl.pallas_call(
        _side_gate_kernel,
        out_shape=jax.ShapeDtypeStruct((rows, lane_w), out_dtype),
        grid=grid,
        in_specs=[
            pl.BlockSpec(memory_space=pltpu.SMEM),              # raw gate scalar
            pl.BlockSpec((tile_r, lane_w), lambda i: (i, 0)),   # row tile of x
        ],
        out_specs=pl.BlockSpec((tile_r, lane_w), lambda i: (i, 0)),
        compiler_params=pltpu.CompilerParams(
            dimension_semantics=("parallel",),
            vmem_limit_bytes=_VMEM_LIMIT),
    )(gate, x2)


@jax.jit
def _side_gate_impl(x, gate):
    orig_shape = x.shape
    n = x.size

    # torch promotion: float tensors keep dtype; int tensors + float scalar -> f32.
    out_dtype = x.dtype if jnp.issubdtype(x.dtype, jnp.floating) else jnp.float32

    if n == 0:
        return x.astype(out_dtype)

    itemsize = jnp.dtype(x.dtype).itemsize
    last = x.shape[-1] if x.ndim >= 1 else 1

    # Layout selection (all static under jit).
    if n % _PREF_LANE_W == 0:
        # Zero-copy: flat stream reshapes exactly to (rows, 1024).
        lane_w, rows, pad = _PREF_LANE_W, n // _PREF_LANE_W, 0
    elif (x.ndim >= 2 and last % 128 == 0 and last > 0
          and last * itemsize * 8 <= _TILE_BYTES):
        # Zero-copy: run directly on (-1, last_dim), last dim already lane-aligned.
        lane_w, rows, pad = last, n // last, 0
    else:
        # Ragged: pad only the <=1023-element tail of the flat stream.
        rows = pl.cdiv(n, _PREF_LANE_W)
        lane_w, pad = _PREF_LANE_W, rows * _PREF_LANE_W - n

    if pad:
        x2 = jnp.pad(x.reshape(-1), (0, pad)).reshape(rows, lane_w)
    else:
        x2 = x.reshape(rows, lane_w)

    out2 = _run_2d(x2, gate, out_dtype)

    if pad:
        return out2.reshape(-1)[:n].reshape(orig_shape)
    return out2.reshape(orig_shape)


def side_gate(x: jax.Array, hookbox: HookBox) -> jax.Array:
    """Pallas equivalent of SideGate.forward(x) = x + sigmoid(hookbox.get())."""
    # Gate passed as a traced argument so a changed hookbox value is never
    # baked into the jitted computation as a stale constant.
    gate = jnp.asarray([hookbox.get()], dtype=jnp.float32)
    return _side_gate_impl(x, gate)


if __name__ == "__main__":
    key = jax.random.PRNGKey(0)
    x = jax.random.normal(key, (2, 4, 16, 16), dtype=jnp.float32)

    hookbox = HookBox(value=0.5)  # deterministic "parameter" of the module

    out = side_gate(x, hookbox)
    out = jax.block_until_ready(out)

    # Reference check against plain JAX (matches the PyTorch forward).
    ref = x + jax.nn.sigmoid(jnp.asarray(hookbox.get(), dtype=jnp.float32))
    assert out.shape == x.shape and out.dtype == x.dtype
    assert jnp.allclose(out, ref, atol=1e-6, rtol=1e-6)

    print("KERNEL_OK")
</pallas_src>

<mosaic_0001>
module attributes {stable_mosaic.version = 11 : i64} {
  func.func @_side_gate_kernel(%arg0: i32, %arg1: memref<1xf32, #tpu.memory_space<smem>>, %arg2: memref<2x1024xf32, #tpu.memory_space<vmem>>, %arg3: memref<2x1024xf32, #tpu.memory_space<vmem>>) attributes {dimension_semantics = [#tpu.dimension_semantics<parallel>], iteration_bounds = array<i64: 1>, scalar_prefetch = 0 : i64, scratch_operands = 0 : i64, tpu.core_type = #tpu.core_type<tc>, window_params = [{transform_indices = @transform_0, window_bounds = array<i64: 1>}, {transform_indices = @transform_1, window_bounds = array<i64: 2, 1024>}, {transform_indices = @transform_2, window_bounds = array<i64: 2, 1024>}]} {
    %c0 = arith.constant 0 : index
    %0 = memref.load %arg1[%c0] : memref<1xf32, #tpu.memory_space<smem>>
    %1 = vector.broadcast %0 : f32 to vector<1x1xf32>
    %cst = arith.constant 0.000000e+00 : f32
    %2 = vector.broadcast %cst : f32 to vector<1x1xf32>
    %3 = arith.subf %2, %1 : vector<1x1xf32>
    %4 = math.exp %3 : vector<1x1xf32>
    %cst_0 = arith.constant 1.000000e+00 : f32
    %5 = vector.broadcast %cst_0 : f32 to vector<1x1xf32>
    %6 = arith.addf %5, %4 : vector<1x1xf32>
    %cst_1 = arith.constant 1.000000e+00 : f32
    %7 = vector.broadcast %cst_1 : f32 to vector<1x1xf32>
    %8 = arith.divf %7, %6 : vector<1x1xf32>
    %c0_2 = arith.constant 0 : index
    %c0_3 = arith.constant 0 : index
    %9 = vector.load %arg2[%c0_2, %c0_3] : memref<2x1024xf32, #tpu.memory_space<vmem>>, vector<2x1024xf32>
    %10 = vector.broadcast %8 : vector<1x1xf32> to vector<2x1024xf32>
    %11 = arith.addf %9, %10 : vector<2x1024xf32>
    %c0_4 = arith.constant 0 : index
    %c0_5 = arith.constant 0 : index
    %12 = vector.load %arg3[%c0_4, %c0_5] : memref<2x1024xf32, #tpu.memory_space<vmem>>, vector<2x1024xf32>
    tpu.vector_store %arg3[%c0_4, %c0_5], %11 {strides = array<i32>} : memref<2x1024xf32, #tpu.memory_space<vmem>>, vector<2x1024xf32>,
    return
  }
  func.func @transform_0(%arg0: i32) -> i32 {
    %c0_i32 = arith.constant 0 : i32
    %c0_i32_0 = arith.constant 0 : i32
    return %c0_i32 : i32
  }
  func.func @transform_1(%arg0: i32) -> (i32, i32) {
    %c0_i32 = arith.constant 0 : i32
    %c0_i32_0 = arith.constant 0 : i32
    return %arg0, %c0_i32 : i32, i32
  }
  func.func @transform_2(%arg0: i32) -> (i32, i32) {
    %c0_i32 = arith.constant 0 : i32
    %c0_i32_0 = arith.constant 0 : i32
    return %arg0, %c0_i32 : i32, i32
  }
}

</mosaic_0001>

<bundles_post_ra>
// kernel: _side_gate_impl.1
= control target key start
LH: loop header
LB: loop body
LE: loop exit
PB: predicated region body
PF: predicated region fallthrough
CT: control target
= control target key end

     0   :  { %s64_s0 = inlined_call_operand.<no memory space> [shape: f32[1], index: 0, kind: input, shape index: {}]   ;;  %s65_s1 = inlined_call_operand.vmem [shape: f32[2,1024], index: 1, kind: input, shape index: {}]   ;;  %s66_s2 = inlined_call_operand.vmem [shape: f32[2,1024], index: 2, kind: output, shape index: {}]  }
   0x1   :  { %v13_v0 = vstv %s64_s0  ;;  %v20_v5 = vld [vmem:[%s65_s1] sm:$0xff]  ;;  %v21_v6 = vld [vmem:[%s65_s1 + $0x8] sm:$0xff] }
   0x2   :  { %v14_v1 = vsub.f32 0.0, %v13_v0 }
   0x4   :  { %v15_v2 = vmul.f32 1.442695, %v14_v1 }
   0x6   :  { %30 = vpow2.f32 %v15_v2 }
  0x13   :  { %v31_v3 = vpop.eup %30 }
  0x14   :  { %v17_v4 = vadd.f32 1.0, %v31_v3 }
  0x16   :  { %32 = vrcp.f32 %v17_v4 }
  0x23   :  { %v33_v7 = vpop.eup %32 }
  0x24   :  { %v22_v8 = vadd.f32 %v33_v7, %v20_v5  ;;  %v23_v9 = vadd.f32 %v33_v7, %v21_v6 }
  0x26   :  { %24 = vst [vmem:[%s66_s2] sm:$0xff] %v22_v8  ;;  %25 = vst [vmem:[%s66_s2 + $0x8] sm:$0xff] %v23_v9 }

</bundles_post_ra>
